<compile_context>
chip_gen: v7x
topology: tpu7x:2x2x1
jax: 0.10.0
libtpu: 0.0.40
codegen_flags: <defaults>
</compile_context>

<pallas_src>
import functools

import jax
import jax.numpy as jnp
from jax.experimental import pallas as pl
from jax.experimental.pallas import tpu as pltpu


# --------------------------------------------------------------------------- kernels
def _kernel_project(x_ref, w0_ref, b0_ref, ws_ref, w1_ref, b1_ref, o_ref):
    """Projection shortcut: out = x@Ws^T + fc_1(relu(fc_0(relu(x)))), bf16 MXU / f32 accum."""
    # Shortcut dot first (shortest live range for the x tile), accumulate in f32.
    acc = jnp.dot(x_ref[...].astype(jnp.bfloat16), ws_ref[...],
                  preferred_element_type=jnp.float32)
    h = jnp.maximum(x_ref[...], 0.0).astype(jnp.bfloat16)                 # actvn(x)
    net = jnp.dot(h, w0_ref[...], preferred_element_type=jnp.float32) + b0_ref[...]
    a = jnp.maximum(net, 0.0).astype(jnp.bfloat16)                        # actvn(net)
    acc = acc + jnp.dot(a, w1_ref[...], preferred_element_type=jnp.float32) + b1_ref[...]
    o_ref[...] = acc.astype(o_ref.dtype)


def _kernel_identity(x_ref, w0_ref, b0_ref, w1_ref, b1_ref, o_ref):
    """Identity shortcut (size_in == size_out): residual add kept exact in f32."""
    h = jnp.maximum(x_ref[...], 0.0).astype(jnp.bfloat16)
    net = jnp.dot(h, w0_ref[...], preferred_element_type=jnp.float32) + b0_ref[...]
    a = jnp.maximum(net, 0.0).astype(jnp.bfloat16)
    dx = jnp.dot(a, w1_ref[...], preferred_element_type=jnp.float32) + b1_ref[...]
    o_ref[...] = (x_ref[...] + dx).astype(o_ref.dtype)                    # re-read x at use


# --------------------------------------------------------------------------- sizing helpers
def _round_up(v, m):
    return ((v + m - 1) // m) * m


def _vmem_capacity_bytes():
    try:
        return int(pltpu.get_tpu_info().vmem_capacity_bytes)
    except Exception:
        return 64 * 1024 * 1024  # v7x floor; v5e/v6e have 128 MiB


def _per_row_vmem_bytes(size_in_k, size_h_p, size_out_p):
    # double-buffered f32 x/out tiles + live f32 hidden + bf16 cast temporaries, per row
    return (8 * size_in_k + 8 * size_out_p + 4 * size_h_p
            + 2 * (size_in_k + size_h_p + size_out_p))


def _pick_tm(n, size_in_k, size_h_p, size_out_p, weight_bytes, vmem_budget=None):
    """Largest multiple-of-8 row tile fitting the (capacity-aware) VMEM budget, after
    accounting for the double-buffered resident weights; keeps >= 2 grid steps so both
    v7x TensorCores get work."""
    if vmem_budget is None:
        vmem_budget = _vmem_capacity_bytes() // 2
    per_row = _per_row_vmem_bytes(size_in_k, size_h_p, size_out_p)
    avail = max(vmem_budget - 2 * weight_bytes - (2 << 20), 8 * per_row)
    tm = int(min(avail // per_row, 8192))
    if n > 8:
        tm = min(tm, _round_up(-(-n // 2), 8))     # >= 2 grid steps (v7x dual-TC)
    tm = min(tm, _round_up(n, 8))
    return max(8, (tm // 8) * 8)


def _vmem_limit_bytes(tm, size_in_k, size_h_p, size_out_p, weight_bytes):
    needed = 2 * weight_bytes + tm * _per_row_vmem_bytes(size_in_k, size_h_p, size_out_p)
    needed += 4 << 20  # slack for compiler scratch
    cap = _vmem_capacity_bytes()
    return int(max(32 << 20, min(needed, (cap * 3) // 4)))


# --------------------------------------------------------------------------- param prep
def prepare_params(params, weight_dtype=jnp.bfloat16):
    """One-time weight prep: transpose PyTorch (out,in) weights to (in,out), zero-pad
    size_h/size_out up to multiples of 128 (lane-dense MXU/stores), cast weights to bf16.
    Biases stay f32 (added outside the dots)."""
    w0 = jnp.asarray(params["w0"], jnp.float32)          # (size_h, size_in)
    b0 = jnp.asarray(params["b0"], jnp.float32)
    w1 = jnp.asarray(params["w1"], jnp.float32)          # (size_out, size_h)
    b1 = jnp.asarray(params["b1"], jnp.float32)
    ws = params.get("ws")
    size_h, size_in = w0.shape
    size_out = w1.shape[0]
    size_h_p = _round_up(size_h, 128)
    size_out_p = _round_up(size_out, 128)
    identity = ws is None
    # Identity path: x itself gets column-padded to size_out_p in the wrapper, so fc_0's
    # input dim (= rows of w0_t) must match that padded width.
    size_in_k = size_out_p if identity else size_in

    w0_t = jnp.zeros((size_in_k, size_h_p), jnp.float32).at[:size_in, :size_h].set(w0.T)
    b0_p = jnp.zeros((1, size_h_p), jnp.float32).at[:, :size_h].set(b0)
    w1_t = jnp.zeros((size_h_p, size_out_p), jnp.float32).at[:size_h, :size_out].set(w1.T)
    b1_p = jnp.zeros((1, size_out_p), jnp.float32).at[:, :size_out].set(b1)

    prepped = {
        "w0_t": w0_t.astype(weight_dtype),
        "b0": b0_p,
        "w1_t": w1_t.astype(weight_dtype),
        "b1": b1_p,
        "meta": {"size_in": int(size_in), "size_h": int(size_h),
                 "size_out": int(size_out), "identity": bool(identity)},
    }
    if not identity:
        ws_t = jnp.zeros((size_in, size_out_p), jnp.float32)
        ws_t = ws_t.at[:, :size_out].set(jnp.asarray(ws, jnp.float32).T)
        prepped["ws_t"] = ws_t.astype(weight_dtype)
    return prepped


# --------------------------------------------------------------------------- forward
@functools.partial(jax.jit, static_argnames=("size_out", "tm", "identity"))
def _forward(x, w0_t, b0, w1_t, b1, ws_t, *, size_out, tm, identity):
    n = x.shape[0]
    size_in_k, size_h_p = w0_t.shape
    size_out_p = w1_t.shape[1]

    # Identity path with non-128-multiple width: pad x columns once so the residual add
    # and the output store are both lane-dense. No-op when widths already align.
    if x.shape[1] < size_in_k:
        x = jnp.pad(x, ((0, 0), (0, size_in_k - x.shape[1])))
    n_pad = -(-n // tm) * tm
    if n_pad != n:
        x = jnp.pad(x, ((0, n_pad - n), (0, 0)))

    grid = (n_pad // tm,)
    x_spec = pl.BlockSpec((tm, size_in_k), lambda i: (i, 0))
    out_spec = pl.BlockSpec((tm, size_out_p), lambda i: (i, 0))
    resident = lambda arr: pl.BlockSpec(arr.shape, lambda i: (0, 0))   # VMEM-resident

    if identity:
        kernel = _kernel_identity
        operands = (x, w0_t, b0, w1_t, b1)
        flops = 2 * n_pad * (size_in_k * size_h_p + size_h_p * size_out_p)
    else:
        kernel = _kernel_project
        operands = (x, w0_t, b0, ws_t, w1_t, b1)
        flops = 2 * n_pad * (size_in_k * size_h_p + size_h_p * size_out_p
                             + size_in_k * size_out_p)

    in_specs = [x_spec] + [resident(op) for op in operands[1:]]
    weight_bytes = int(sum(op.size * op.dtype.itemsize for op in operands[1:]))
    cost = pl.CostEstimate(
        flops=int(flops), transcendentals=0,
        bytes_accessed=int(4 * n_pad * (size_in_k + size_out_p) + weight_bytes))

    out = pl.pallas_call(
        kernel,
        out_shape=jax.ShapeDtypeStruct((n_pad, size_out_p), jnp.float32),
        grid=grid,
        in_specs=in_specs,
        out_specs=out_spec,
        compiler_params=pltpu.CompilerParams(
            dimension_semantics=("parallel",),
            vmem_limit_bytes=_vmem_limit_bytes(tm, size_in_k, size_h_p,
                                               size_out_p, weight_bytes)),
        cost_estimate=cost,
    )(*operands)
    return out[:n, :size_out]


def resnet_block_fc(x, prepped, tm=None):
    """ResnetBlockFC forward. x: [N, size_in] float32; prepped: output of prepare_params()."""
    meta = prepped["meta"]
    size_in_k, size_h_p = prepped["w0_t"].shape
    size_out_p = prepped["w1_t"].shape[1]
    keys = ["w0_t", "b0", "w1_t", "b1"] + ([] if meta["identity"] else ["ws_t"])
    weight_bytes = int(sum(prepped[k].size * prepped[k].dtype.itemsize for k in keys))
    if tm is None:
        tm = _pick_tm(x.shape[0], size_in_k, size_h_p, size_out_p, weight_bytes)
    return _forward(x, prepped["w0_t"], prepped["b0"], prepped["w1_t"], prepped["b1"],
                    prepped.get("ws_t"),
                    size_out=meta["size_out"], tm=int(tm), identity=meta["identity"])


# --------------------------------------------------------------------------- reference & init
def init_params(key, size_in, size_out=None, size_h=None):
    """Deterministic init mirroring ResnetBlockFC.__init__ (PyTorch layout); fc_1.weight = 0."""
    if size_out is None:
        size_out = size_in
    if size_h is None:
        size_h = min(size_in, size_out)
    k0, k1, k2, k3 = jax.random.split(key, 4)
    bound0 = 1.0 / jnp.sqrt(size_in)
    bound1 = 1.0 / jnp.sqrt(size_h)
    return {
        "w0": jax.random.uniform(k0, (size_h, size_in), jnp.float32, -bound0, bound0),
        "b0": jax.random.uniform(k1, (size_h,), jnp.float32, -bound0, bound0),
        "w1": jnp.zeros((size_out, size_h), jnp.float32),           # nn.init.zeros_
        "b1": jax.random.uniform(k2, (size_out,), jnp.float32, -bound1, bound1),
        "ws": (jax.random.uniform(k3, (size_out, size_in), jnp.float32, -bound0, bound0)
               if size_in != size_out else None),
    }


def resnet_block_fc_ref(x, params, matmul_dtype=jnp.float32):
    """Pure-JAX reference; matmul_dtype=bf16 mirrors the kernel's MXU precision."""
    w0 = params["w0"].astype(matmul_dtype)
    w1 = params["w1"].astype(matmul_dtype)
    h = jnp.maximum(x, 0.0).astype(matmul_dtype)
    net = jnp.dot(h, w0.T, preferred_element_type=jnp.float32) + params["b0"]
    a = jnp.maximum(net, 0.0).astype(matmul_dtype)
    dx = jnp.dot(a, w1.T, preferred_element_type=jnp.float32) + params["b1"]
    if params.get("ws") is not None:
        x_s = jnp.dot(x.astype(matmul_dtype), params["ws"].T.astype(matmul_dtype),
                      preferred_element_type=jnp.float32)
    else:
        x_s = x
    return x_s + dx


# --------------------------------------------------------------------------- test
if __name__ == "__main__":
    key = jax.random.PRNGKey(0)
    kx, kp, kw = jax.random.split(key, 3)

    # Projection-shortcut path: size_in=32 -> size_out=64 (size_h = min = 32).
    N, SIZE_IN, SIZE_OUT = 16, 32, 64
    SIZE_H = min(SIZE_IN, SIZE_OUT)
    x = jax.random.normal(kx, (N, SIZE_IN), jnp.float32)
    params = init_params(kp, SIZE_IN, SIZE_OUT)
    out = jax.block_until_ready(resnet_block_fc(x, prepare_params(params)))
    assert out.shape == (N, SIZE_OUT)
    assert jnp.allclose(out, resnet_block_fc_ref(x, params, jnp.bfloat16),
                        atol=1e-4, rtol=1e-4)
    # Coarse sanity check against the full-f32 reference (bf16 MXU rounding tolerance).
    assert jnp.allclose(out, resnet_block_fc_ref(x, params), atol=5e-2, rtol=5e-2)

    # Same block with non-zero fc_1 weight so the hidden matmul is numerically exercised.
    params_nz = dict(params)
    params_nz["w1"] = jax.random.normal(kw, (SIZE_OUT, SIZE_H), jnp.float32) * 0.1
    out_nz = jax.block_until_ready(resnet_block_fc(x, prepare_params(params_nz)))
    assert jnp.allclose(out_nz, resnet_block_fc_ref(x, params_nz, jnp.bfloat16),
                        atol=1e-4, rtol=1e-4)

    # Identity-shortcut path (size_in == size_out) with N not divisible by the row tile:
    # exercises padded rows, padded output columns (32 -> 128), and a multi-step grid.
    N2 = 40
    x2 = jax.random.normal(kx, (N2, SIZE_IN), jnp.float32)
    params_id = init_params(kp, SIZE_IN, SIZE_IN)
    params_id["w1"] = jax.random.normal(kw, (SIZE_IN, SIZE_IN), jnp.float32) * 0.1
    out_id = jax.block_until_ready(resnet_block_fc(x2, prepare_params(params_id), tm=16))
    assert out_id.shape == (N2, SIZE_IN)
    assert jnp.allclose(out_id, resnet_block_fc_ref(x2, params_id, jnp.bfloat16),
                        atol=1e-4, rtol=1e-4)
    assert jnp.allclose(out_id, resnet_block_fc_ref(x2, params_id), atol=1e-1, rtol=1e-1)

    print("KERNEL_OK")
</pallas_src>

<mosaic_0001>
module attributes {stable_mosaic.version = 11 : i64} {
  func.func @_kernel_project(%arg0: i32, %arg1: memref<8x32xf32, #tpu.memory_space<vmem>>, %arg2: memref<32x128xbf16, #tpu.memory_space<vmem>>, %arg3: memref<1x128xf32, #tpu.memory_space<vmem>>, %arg4: memref<32x128xbf16, #tpu.memory_space<vmem>>, %arg5: memref<128x128xbf16, #tpu.memory_space<vmem>>, %arg6: memref<1x128xf32, #tpu.memory_space<vmem>>, %arg7: memref<8x128xf32, #tpu.memory_space<vmem>>) attributes {dimension_semantics = [#tpu.dimension_semantics<parallel>], iteration_bounds = array<i64: 2>, scalar_prefetch = 0 : i64, scratch_operands = 0 : i64, tpu.core_type = #tpu.core_type<tc>, window_params = [{transform_indices = @transform_0, window_bounds = array<i64: 8, 32>}, {pipeline_mode = #tpu.pipeline_mode<synchronous>, transform_indices = @transform_1, window_bounds = array<i64: 32, 128>}, {pipeline_mode = #tpu.pipeline_mode<synchronous>, transform_indices = @transform_2, window_bounds = array<i64: 1, 128>}, {pipeline_mode = #tpu.pipeline_mode<synchronous>, transform_indices = @transform_3, window_bounds = array<i64: 32, 128>}, {pipeline_mode = #tpu.pipeline_mode<synchronous>, transform_indices = @transform_4, window_bounds = array<i64: 128, 128>}, {pipeline_mode = #tpu.pipeline_mode<synchronous>, transform_indices = @transform_5, window_bounds = array<i64: 1, 128>}, {transform_indices = @transform_6, window_bounds = array<i64: 8, 128>}]} {
    %c0 = arith.constant 0 : index
    %c0_0 = arith.constant 0 : index
    %0 = vector.load %arg1[%c0, %c0_0] : memref<8x32xf32, #tpu.memory_space<vmem>>, vector<8x32xf32>
    %1 = arith.truncf %0 : vector<8x32xf32> to vector<8x32xbf16>
    %c0_1 = arith.constant 0 : index
    %c0_2 = arith.constant 0 : index
    %2 = vector.load %arg4[%c0_1, %c0_2] : memref<32x128xbf16, #tpu.memory_space<vmem>>, vector<32x128xbf16>
    %cst = arith.constant dense<0.000000e+00> : vector<8x128xf32>
    %3 = tpu.matmul %1, %2, %cst {dimension_numbers = #tpu.dot_dimension_numbers<[1], [0], [0], [1], [0, 0, 1, 1], [], []>} : vector<8x32xbf16>, vector<32x128xbf16>, vector<8x128xf32> -> vector<8x128xf32>
    %c0_3 = arith.constant 0 : index
    %c0_4 = arith.constant 0 : index
    %4 = vector.load %arg1[%c0_3, %c0_4] : memref<8x32xf32, #tpu.memory_space<vmem>>, vector<8x32xf32>
    %cst_5 = arith.constant 0.000000e+00 : f32
    %5 = vector.broadcast %cst_5 : f32 to vector<8x32xf32>
    %6 = arith.maximumf %4, %5 : vector<8x32xf32>
    %7 = arith.truncf %6 : vector<8x32xf32> to vector<8x32xbf16>
    %c0_6 = arith.constant 0 : index
    %c0_7 = arith.constant 0 : index
    %8 = vector.load %arg2[%c0_6, %c0_7] : memref<32x128xbf16, #tpu.memory_space<vmem>>, vector<32x128xbf16>
    %cst_8 = arith.constant dense<0.000000e+00> : vector<8x128xf32>
    %9 = tpu.matmul %7, %8, %cst_8 {dimension_numbers = #tpu.dot_dimension_numbers<[1], [0], [0], [1], [0, 0, 1, 1], [], []>} : vector<8x32xbf16>, vector<32x128xbf16>, vector<8x128xf32> -> vector<8x128xf32>
    %c0_9 = arith.constant 0 : index
    %c0_10 = arith.constant 0 : index
    %10 = vector.load %arg3[%c0_9, %c0_10] : memref<1x128xf32, #tpu.memory_space<vmem>>, vector<1x128xf32>
    %11 = vector.broadcast %10 : vector<1x128xf32> to vector<8x128xf32>
    %12 = arith.addf %9, %11 : vector<8x128xf32>
    %cst_11 = arith.constant 0.000000e+00 : f32
    %13 = vector.broadcast %cst_11 : f32 to vector<8x128xf32>
    %14 = arith.maximumf %12, %13 : vector<8x128xf32>
    %15 = arith.truncf %14 : vector<8x128xf32> to vector<8x128xbf16>
    %c0_12 = arith.constant 0 : index
    %c0_13 = arith.constant 0 : index
    %16 = vector.load %arg5[%c0_12, %c0_13] : memref<128x128xbf16, #tpu.memory_space<vmem>>, vector<128x128xbf16>
    %cst_14 = arith.constant dense<0.000000e+00> : vector<8x128xf32>
    %17 = tpu.matmul %15, %16, %cst_14 {dimension_numbers = #tpu.dot_dimension_numbers<[1], [0], [0], [1], [0, 0, 1, 1], [], []>} : vector<8x128xbf16>, vector<128x128xbf16>, vector<8x128xf32> -> vector<8x128xf32>
    %18 = arith.addf %3, %17 : vector<8x128xf32>
    %c0_15 = arith.constant 0 : index
    %c0_16 = arith.constant 0 : index
    %19 = vector.load %arg6[%c0_15, %c0_16] : memref<1x128xf32, #tpu.memory_space<vmem>>, vector<1x128xf32>
    %20 = vector.broadcast %19 : vector<1x128xf32> to vector<8x128xf32>
    %21 = arith.addf %18, %20 : vector<8x128xf32>
    %c0_17 = arith.constant 0 : index
    %c0_18 = arith.constant 0 : index
    %22 = vector.load %arg7[%c0_17, %c0_18] : memref<8x128xf32, #tpu.memory_space<vmem>>, vector<8x128xf32>
    tpu.vector_store %arg7[%c0_17, %c0_18], %21 {strides = array<i32>} : memref<8x128xf32, #tpu.memory_space<vmem>>, vector<8x128xf32>,
    return
  }
  func.func @transform_0(%arg0: i32) -> (i32, i32) {
    %c0_i32 = arith.constant 0 : i32
    %c0_i32_0 = arith.constant 0 : i32
    return %arg0, %c0_i32 : i32, i32
  }
  func.func @transform_1(%arg0: i32) -> (i32, i32) {
    %c0_i32 = arith.constant 0 : i32
    %c0_i32_0 = arith.constant 0 : i32
    %c0_i32_1 = arith.constant 0 : i32
    return %c0_i32, %c0_i32_0 : i32, i32
  }
  func.func @transform_2(%arg0: i32) -> (i32, i32) {
    %c0_i32 = arith.constant 0 : i32
    %c0_i32_0 = arith.constant 0 : i32
    %c0_i32_1 = arith.constant 0 : i32
    return %c0_i32, %c0_i32_0 : i32, i32
  }
  func.func @transform_3(%arg0: i32) -> (i32, i32) {
    %c0_i32 = arith.constant 0 : i32
    %c0_i32_0 = arith.constant 0 : i32
    %c0_i32_1 = arith.constant 0 : i32
    return %c0_i32, %c0_i32_0 : i32, i32
  }
  func.func @transform_4(%arg0: i32) -> (i32, i32) {
    %c0_i32 = arith.constant 0 : i32
    %c0_i32_0 = arith.constant 0 : i32
    %c0_i32_1 = arith.constant 0 : i32
    return %c0_i32, %c0_i32_0 : i32, i32
  }
  func.func @transform_5(%arg0: i32) -> (i32, i32) {
    %c0_i32 = arith.constant 0 : i32
    %c0_i32_0 = arith.constant 0 : i32
    %c0_i32_1 = arith.constant 0 : i32
    return %c0_i32, %c0_i32_0 : i32, i32
  }
  func.func @transform_6(%arg0: i32) -> (i32, i32) {
    %c0_i32 = arith.constant 0 : i32
    %c0_i32_0 = arith.constant 0 : i32
    return %arg0, %c0_i32 : i32, i32
  }
}

</mosaic_0001>

<bundles_post_ra>
// kernel: _forward.1
= control target key start
LH: loop header
LB: loop body
LE: loop exit
PB: predicated region body
PF: predicated region fallthrough
CT: control target
= control target key end

     0   :  { %11 = vsyncpa [#allocation3], 0  ;;  %s1262_s0 = inlined_call_operand.hbm [shape: f32[16,32], index: 0, kind: input, shape index: {}]   ;;  %s1263_s1 = inlined_call_operand.hbm [shape: bf16[32,128], index: 1, kind: input, shape index: {}]   ;;  %s1264_s2 = inlined_call_operand.vmem [shape: f32[1,128], index: 2, kind: input, shape index: {}]   ;;  %s1265_s3 = inlined_call_operand.vmem [shape: bf16[32,128], index: 3, kind: input, shape index: {}]   ;;  %s1266_s4 = inlined_call_operand.hbm [shape: bf16[128,128], index: 4, kind: input, shape index: {}]   ;;  %s1267_s5 = inlined_call_operand.vmem [shape: f32[1,128], index: 5, kind: input, shape index: {}]   ;;  %s1268_s6 = inlined_call_operand.hbm [shape: f32[16,128], index: 6, kind: output, shape index: {}]  }
   0x1   :  { %13 = vsyncpa [#allocation3 + $0x1], 0 }
   0x2   :  { %14 = vsyncpa [#allocation6], 0 }
   0x3   :  { %15 = vsyncpa [#allocation4], 0 }
   0x4   :  { %17 = vsyncpa [#allocation4 + $0x1], 0  ;;  %s1012_s21 = smov 0   ;;  %s1014_s22 = smov 0  }
   0x5   :  { %s1016_s23 = smov 0   ;;  %s1018_s24 = smov 0  }
   0x6 LB: > { %s1033_s25 = sadd.s32 4294967295, %s967_s24   ;;  %s645_s26 = sadd.s32 4294967294, %s967_s24   ;;  %s967_s24 = sphi %s1018_s24, %s1288_s24   ;;  %s963_s23 = sphi %s1016_s23, %s1287_s23   ;;  %s959_s22 = sphi %s1014_s22, %s1286_s22   ;;  %s955_s21 = sphi %s1012_s21, %s1285_s21  }
   0x7   : > { %p43_p0 = scmp.ne.s32.totalorder %s959_s22, %s955_s21  ;;  %p1269_p1 = scmp.eq.s32.totalorder %s1033_s25, 0 }
   0x8   : > { %p178_p3 = scmp.eq.s32.totalorder %s645_s26, 1  ;;  %p646_p5 = scmp.ge.s32.totalorder %s967_s24, 1 }
   0x9   : > { %p1042_p4 = por %p1269_p1, %p43_p0  ;;  %p185_p7 = scmp.lt.s32.totalorder %s967_s24, 3 }
   0xa   : > { %p1047_p6 = por %p178_p3, %p43_p0  ;;  %s969_s30 = smov [#allocation5]  }
   0xb   : > { %s1272_s27 = scalar_select %p1042_p4, 1, 0 }
   0xc   : > { %s1273_s28 = scalar_select %p1047_p6, 1, 0 }
   0xd   : > { %p1052_p8 = pnand %p646_p5, %p185_p7  ;;  %s197_s7 = sshll.u32 %s969_s30, 4  ;;  %s1056_s7 = int_to_ptr.vmem [resolvable:$true] %s197_s7 }
   0xe   : > { %s970_s9 = smov [#allocation7]   ;;  %s811_s13 = scalar_lea.hbm %s1263_s1, 256 }
   0xf   : > { %p740_p9 = pneg %p1052_p8  ;;  %s216_s10 = sshll.u32 %s970_s9, 4  ;;  %s1067_s10 = int_to_ptr.vmem [resolvable:$true] %s216_s10 }
  0x10   : > { %p812_p12 = scmp.ne.s32.totalorder %s1263_s1, %s811_s13  ;;  %p818_p5 = scmp.lt.u32.totalorder %s811_s13, %s1263_s1 }
  0x11   : > { %p1063_p11 = pnand %p740_p9, %p1269_p1 }
  0x13   : > { %p813_p13 = pneg %p1063_p11 }
  0x15   : > { %p814_p0 = pnand %p813_p13, %p812_p12 }
  0x17   : > { %p815_p3 = pneg %p814_p0 }
  0x19   : > { %p820_p7 = pnand %p818_p5, %p815_p3 }
  0x1b   : > { %823 = shalt.err (!%p820_p7)
}
  0x1c   : > { %s824_s18 = scalar_lea.vmem %s1056_s7, 256  ;;  %p832_p2 = scmp.lt.s32.totalorder %s1056_s7, %s1056_s7 }
  0x1d   : > { %p825_p9 = scmp.ne.s32.totalorder %s1056_s7, %s824_s18  ;;  %p833_p12 = scmp.lt.s32.totalorder %s824_s18, %s824_s18 }
  0x1f   : > { %p827_p10 = pnand %p825_p9, %p813_p13  ;;  %p834_p0 = por %p833_p12, %p832_p2 }
  0x21   : > { %p828_p1 = pneg %p827_p10 }
  0x23   : > { %p835_p6 = pnand %p834_p0, %p828_p1 }
  0x25   : > { %838 = shalt.err (!%p835_p6)
}
  0x26   : > { %s971_s19 = smov 64   ;;  %s972_s20 = smov 4  }
  0x27   : > { %743 = dma.hbm_to_vmem [thread:$0]  (!%p1063_p11), %s1263_s1, 256, %s1056_s7, [#allocation6], %s971_s19, %s971_s19, %s972_s20  }
  0x28   : > { %s839_s12 = scalar_lea.hbm %s1266_s4, 1024 }
  0x29   : > { %p840_p2 = scmp.ne.s32.totalorder %s1266_s4, %s839_s12  ;;  %p846_p10 = scmp.lt.u32.totalorder %s839_s12, %s1266_s4 }
  0x2b   : > { %p842_p1 = pnand %p840_p2, %p813_p13 }
  0x2d   : > { %p843_p6 = pneg %p842_p1 }
  0x2f   : > { %p848_p3 = pnand %p846_p10, %p843_p6 }
  0x31   : > { %851 = shalt.err (!%p848_p3)
}
  0x32   : > { %s852_s7 = scalar_lea.vmem %s1067_s10, 1024  ;;  %p860_p12 = scmp.lt.s32.totalorder %s1067_s10, %s1067_s10 }
  0x33   : > { %p853_p5 = scmp.ne.s32.totalorder %s1067_s10, %s852_s7  ;;  %p861_p0 = scmp.lt.s32.totalorder %s852_s7, %s852_s7 }
  0x35   : > { %p855_p7 = pnand %p853_p5, %p813_p13  ;;  %p862_p2 = por %p861_p0, %p860_p12 }
  0x37   : > { %p856_p9 = pneg %p855_p7 }
  0x39   : > { %p863_p1 = pnand %p862_p2, %p856_p9 }
  0x3b   : > { %866 = shalt.err (!%p863_p1)
}
  0x3c   : > { %746 = dma.hbm_to_vmem [thread:$0]  (!%p1063_p11), %s1266_s4, 1024, %s1067_s10, [#allocation6], %s971_s19, %s971_s19, %s972_s20  }
  0x3d   : > { %s1122_s26 = sadd.s32 1, %s967_s24   ;;  %s30_s8 = sadd.s32 1, %s963_s23 }
  0x3e   : > { %s27_s30 = ssub.s32 %s967_s24, %s1122_s26  ;;  %p37_p13 = scmp.ne.s32.totalorder %s963_s23, %s959_s22 }
  0x3f   : > { %p28_p6 = scmp.eq.s32.totalorder %s27_s30, 0  ;;  %p38_p10 = scmp.eq.s32.totalorder %s967_s24, 0 }
  0x40   : > { %p1276_p3 = scmp.eq.s32.totalorder %s1033_s25, 1  ;;  %p757_p7 = scmp.lt.s32.totalorder %s967_s24, 2 }
  0x41   : > { %s1138_s11 = scalar_select %p28_p6, %s963_s23, %s30_s8  }
  0x42   : > { %p1132_p5 = por %p1276_p3, %p37_p13  ;;  %p39_p9 = por %p38_p10, %p37_p13 }
  0x43   : > { %s233_s12 = sand.u32 1, %s963_s23   ;;  %s651_s10 = sshll.u32 %s967_s24, 7 }
  0x44   : > { %s1277_s9 = scalar_select %p1132_p5, 1, 0 }
  0x45   : > { %s650_s13 = sshll.u32 %s233_s12, 3  ;;  %s1145_s14 = scalar_lea.hbm %s1262_s0, %s651_s10 }
  0x46   : > { %s237_s15 = scalar_lea.vmem [#allocation2], %s650_s13  ;;  %p1149_p11 = pnand %p757_p7, %p39_p9 }
  0x47   : > { %s244_s16 = sshll.u32 %s237_s15, 4  ;;  %s234_s17 = scalar_lea.sflag [#allocation3], %s233_s12  ;;  %s1147_s16 = int_to_ptr.vmem [resolvable:$true] %s244_s16 }
  0x48   : > { %s867_s18 = scalar_lea.hbm %s1145_s14, 128  ;;  %p869_p0 = pneg %p1149_p11 }
  0x49   : > { %p868_p12 = scmp.ne.s32.totalorder %s1145_s14, %s867_s18  ;;  %s872_s13 = scalar_lea.hbm %s1262_s0, 256 }
  0x4a   : > { %p873_p13 = scmp.lt.u32.totalorder %s1145_s14, %s1262_s0  ;;  %p874_p6 = scmp.lt.u32.totalorder %s872_s13, %s867_s18 }
  0x4b   : > { %p870_p2 = pnand %p869_p0, %p868_p12  ;;  %p876_p3 = scmp.lt.u32.totalorder %s867_s18, %s1145_s14 }
  0x4c   : > { %p875_p10 = por %p874_p6, %p873_p13 }
  0x4d   : > { %p871_p1 = pneg %p870_p2 }
  0x4e   : > { %p877_p7 = por %p876_p3, %p875_p10 }
  0x50   : > { %p878_p9 = pnand %p877_p7, %p871_p1 }
  0x52   : > { %881 = shalt.err (!%p878_p9)
}
  0x53   : > { %s882_s12 = scalar_lea.vmem %s1147_s16, 128  ;;  %s973_s20 = smov [#allocation2]  }
  0x54   : > { %p883_p12 = scmp.ne.s32.totalorder %s1147_s16, %s882_s12  ;;  %s887_s15 = sshll.u32 %s973_s20, 4  ;;  %s888_s15 = int_to_ptr.vmem [resolvable:$false] %s887_s15 }
  0x55   : > { %s889_s8 = scalar_lea.vmem %s888_s15, 256  ;;  %p890_p4 = scmp.lt.s32.totalorder %s1147_s16, %s888_s15 }
  0x56   : > { %p885_p2 = pnand %p883_p12, %p869_p0  ;;  %p891_p13 = scmp.lt.s32.totalorder %s889_s8, %s882_s12 }
  0x58   : > { %p886_p5 = pneg %p885_p2  ;;  %p892_p6 = por %p891_p13, %p890_p4 }
  0x5a   : > { %p893_p10 = pnand %p892_p6, %p886_p5 }
  0x5c   : > { %896 = shalt.err (!%p893_p10)
}
  0x5d   : > { %750 = dma.hbm_to_vmem [thread:$0]  (!%p1149_p11), %s1145_s14, 128, %s1147_s16, %s234_s17  }
  0x5e   : > { %253 = sbr.rel (%p1052_p8) target bundleno = 563 (0x233), region = 44  ;;  %s1181_s18 = sand.u32 (!%p1052_p8), 1, %s959_s22  }
  0x5f   : > { %s653_s30 = sshll.u32 (!%p1052_p8), %s1181_s18, 3  ;;  %s256_s13 = scalar_lea.sflag (!%p1052_p8), [#allocation3], %s1181_s18 }
  0x60   : > { %s259_s10 = scalar_lea.vmem (!%p1052_p8), [#allocation2], %s653_s30  ;;  %p1279_p4 = scmp.ne.s32.totalorder (!%p1052_p8), %s1272_s27, 0 }
  0x65   : > { %942 = dma.done.wait (%p1279_p4), %s256_s13, 128  }
  0x66   : > { %944 = vsyncadd (%p1279_p4), %s256_s13, 4294967168  ;;  %p1280_p5 = scmp.eq.s32.totalorder %s1033_s25, 0 }
  0x68   : > { %946 = dma.done.wait (%p1280_p5), [#allocation6], 1280   ;;  %p1281_p8 = pmov %p1280_p5 }
  0x69   : > { %v974_v0 = vmov 0.0   ;;  %vm975_vm0 = vmmov 0   ;;  %v799_v1 = vld [vmem:[#allocation5] sm:$0xff]   ;;  %v800_v2 = vld [vmem:[#allocation5 + $0x8] sm:$0xff]   ;;  %v297_v3 = vld [vmem:[%s259_s10] sm:$0xff]  ;;  %vm328_vm1 = vcmask 261120  }
  0x6a   : > { %948 = vsyncadd (%p1281_p8), [#allocation6], 4294966016  ;;  %692 = vmatprep.subr.bf16.mxu0 %v974_v0  ;;  %696 = vmatprep.mubr.msk.bf16.mxu0 %vm975_vm0, %v974_v0  ;;  %v303_v4 = vmax.f32 %v297_v3, 0.0  ;;  %v801_v5 = vld [vmem:[#allocation7] sm:$0xff]   ;;  %v802_v7 = vld [vmem:[#allocation7 + $0x8] sm:$0xff]   ;;  %v298_v15 = vpack.c.bf16 %v297_v3, %v297_v3  ;;  %s674_s20 = sshll.u32 %s1033_s25, 7 }
  0x6b   : > { %700 = vmatprep.subr.bf16.mxu1 %v974_v0  ;;  %716 = vmatprep.mubr.msk.bf16.mxu1 %vm975_vm0, %v974_v0  ;;  %v803_v8 = vld [vmem:[#allocation7 + $0x10] sm:$0xff]   ;;  %v807_v9 = vld [vmem:[%s1265_s3] sm:$0xff]   ;;  %v804_v10 = vld [vmem:[#allocation7 + $0x18] sm:$0xff]   ;;  %s295_s15 = scalar_lea.vmem [#allocation8], %s653_s30  ;;  %s1218_s27 = scalar_lea.hbm %s1268_s6, %s674_s20 }
  0x6c   : > { %693 = vmatpush3.bf16.msra.mxu0 %v799_v1  ;;  %v304_v6 = vpack.c.bf16 %v303_v4, %v303_v4  ;;  %701 = vmatpush3.bf16.msra.mxu1 %v801_v5  ;;  %v805_v11 = vld [vmem:[#allocation7 + $0x20] sm:$0xff]   ;;  %v806_v12 = vld [vmem:[#allocation7 + $0x28] sm:$0xff]   ;;  %v808_v13 = vld [vmem:[#allocation7 + $0x30] sm:$0xff]   ;;  %s556_s8 = sshll.u32 %s295_s15, 4  ;;  %s543_s25 = scalar_lea.sflag [#allocation4], %s1181_s18  ;;  %s1220_s8 = int_to_ptr.vmem [resolvable:$true] %s556_s8 }
  0x6d   : > { %694 = vmatprep.subr.bf16.mxu0 %v974_v0  ;;  %702 = vmatprep.subr.bf16.mxu1 %v974_v0  ;;  %v809_v14 = vld [vmem:[%s1265_s3 + $0x8] sm:$0xff]   ;;  %v810_v16 = vld [vmem:[#allocation7 + $0x38] sm:$0xff]   ;;  %v657_v17 = vld [vmem:[%s1264_s2] ss:$0 sm:$0xff]  ;;  %s897_s29 = scalar_lea.vmem %s1220_s8, 128  ;;  %p1282_p0 = scmp.ne.s32.totalorder %s1277_s9, 0 }
  0x6e   : > { %v672_v30 = vld [vmem:[%s1267_s5] ss:$0 sm:$0xff]  ;;  %p898_p11 = scmp.ne.s32.totalorder %s1220_s8, %s897_s29  ;;  %s976_s30 = smov [#allocation8]  }
  0x6f   : > { %s901_s14 = sshll.u32 %s976_s30, 4  ;;  %s902_s14 = int_to_ptr.vmem [resolvable:$false] %s901_s14 }
  0x70   : > { %695 = vmatpush3.bf16.msra.mxu0 %v800_v2  ;;  %703 = vmatpush3.bf16.msra.mxu1 %v802_v7  ;;  %p899_p1 = pnand %p898_p11, %p1282_p0  ;;  %s903_s16 = scalar_lea.vmem %s902_s14, 256 }
  0x71   : > { %720 = vmatprep.subr.bf16.mxu0 %v974_v0  ;;  %704 = vmatprep.subr.bf16.mxu1 %v974_v0  ;;  %p904_p7 = scmp.lt.s32.totalorder %s1220_s8, %s902_s14  ;;  %p905_p9 = scmp.lt.s32.totalorder %s903_s16, %s897_s29 }
  0x72   : > { %p900_p3 = pneg %p899_p1 }
  0x73   : > { %697 = vmatmul.mubr.msk.bf16.vlgmr.msra.gmra.mrb[0].mxu0 %vm328_vm1, %v304_v6  ;;  %p906_p12 = por %p905_p9, %p904_p7 }
  0x74   : > { %724 = vmatprep.mubr.msk.bf16.mxu0 %vm975_vm0, %v974_v0  ;;  %721 = vmatpush3.bf16.msra.mxu0 %v807_v9 }
  0x75   : > { %722 = vmatprep.subr.bf16.mxu0 %v974_v0  ;;  %705 = vmatpush3.bf16.msra.mxu1 %v803_v8  ;;  %p907_p2 = pnand %p906_p12, %p900_p3 }
  0x76   : > { %706 = vmatprep.subr.bf16.mxu1 %v974_v0 }
  0x78   : > { %723 = vmatpush3.bf16.msra.mxu0 %v809_v14 }
  0x79   : > { %707 = vmatpush3.bf16.msra.mxu1 %v804_v10 }
  0x7a   : > { %708 = vmatprep.subr.bf16.mxu1 %v974_v0 }
  0x7b   : > { %725 = vmatmul.mubr.msk.bf16.vlgmr.msra.gmra.mrb[4].mxu0 %vm328_vm1, %v298_v15 }
  0x7d   : > { %709 = vmatpush3.bf16.msra.mxu1 %v805_v11 }
  0x7e   : > { %710 = vmatprep.subr.bf16.mxu1 %v974_v0 }
  0x81   : > { %711 = vmatpush3.bf16.msra.mxu1 %v806_v12 }
  0x82   : > { %712 = vmatprep.subr.bf16.mxu1 %v974_v0 }
  0x85   : > { %713 = vmatpush3.bf16.msra.mxu1 %v808_v13 }
  0x86   : > { %714 = vmatprep.subr.bf16.mxu1 %v974_v0 }
  0x89   : > { %715 = vmatpush3.bf16.msra.mxu1 %v810_v16 }
 0x146   : > { %v366_v18 = vpop.f32.mrb[0].mxu0 }
 0x147   : > { %v367_v19 = vadd.f32 %v657_v17, %v366_v18  ;;  %v698_v20 = vpop.f32.mrb[1].mxu0 }
 0x148   : > { %v369_v21 = vpop.f32.mrb[2].mxu0 }
 0x149   : > { %v372_v22 = vmax.f32 %v367_v19, 0.0  ;;  %v699_v23 = vpop.f32.mrb[3].mxu0 }
 0x14b   : > { %v373_v24 = vpack.c.bf16 %v372_v22, %v372_v22 }
 0x14d   : > { %717 = vmatmul.mubr.bf16.vlgmr.msra.gmra.mrb[0].mxu1 %v373_v24 }
 0x14e   : > { %v527_v25 = vpop.f32.mrb[4].mxu0 }
 0x14f   : > { %v726_v26 = vpop.f32.mrb[5].mxu0 }
 0x150   : > { %v530_v27 = vpop.f32.mrb[6].mxu0 }
 0x151   : > { %v727_v28 = vpop.f32.mrb[7].mxu0 }
 0x220   : > { %v472_v29 = vpop.f32.mrb[0].mxu1 }
 0x221   : > { %v528_v31 = vadd.f32 %v527_v25, %v472_v29  ;;  %v718_v32 = vpop.f32.mrb[1].mxu1 }
 0x222   : > { %v475_v33 = vpop.f32.mrb[2].mxu1 }
 0x223   : > { %v540_v34 = vadd.f32 %v672_v30, %v528_v31  ;;  %v719_v35 = vpop.f32.mrb[3].mxu1 }
 0x225   : > { %541 = vst [vmem:[%s295_s15] sm:$0xff] %v540_v34 }
 0x226   : > { %910 = shalt.err (!%p907_p2)
}
 0x227   : > { %s911_s18 = scalar_lea.hbm %s1218_s27, 128  ;;  %s915_s19 = scalar_lea.hbm %s1268_s6, 256 }
 0x228   : > { %p912_p13 = scmp.ne.s32.totalorder %s1218_s27, %s911_s18  ;;  %p916_p4 = scmp.lt.u32.totalorder %s1218_s27, %s1268_s6 }
 0x229   : > { %p917_p5 = scmp.lt.u32.totalorder %s915_s19, %s911_s18  ;;  %p919_p11 = scmp.lt.u32.totalorder %s911_s18, %s1218_s27 }
 0x22a   : > { %p913_p6 = pnand %p912_p13, %p1282_p0 }
 0x22b   : > { %p918_p8 = por %p917_p5, %p916_p4 }
 0x22c   : > { %p914_p10 = pneg %p913_p6 }
 0x22d   : > { %p920_p1 = por %p919_p11, %p918_p8 }
 0x22f   : > { %p921_p3 = pnand %p920_p1, %p914_p10 }
 0x231   : > { %924 = shalt.err (!%p921_p3)
}
 0x232   : > { %738 = dma.vmem_to_hbm [thread:$0]  (%p1282_p0), %s1220_s8, 128, %s1218_s27, %s543_s25  }
 0x233 PF: > { %s568_s15 = sand.u32 1, %s955_s21   ;;  %p1283_p7 = scmp.ne.s32.totalorder %s1273_s28, 0 }
 0x234   : > { %p1284_p9 = scmp.ge.s32.totalorder %s967_s24, 2  ;;  %s569_s13 = scalar_lea.sflag [#allocation4], %s568_s15 }
 0x236   : > { %p752_p12 = pnand %p1284_p9, %p1283_p7 }
 0x238   : > { %950 = dma.done.wait (!%p752_p12), %s569_s13, 128  }
 0x239   : > { %952 = vsyncadd (!%p752_p12), %s569_s13, 4294967168  ;;  %p20_p2 = scmp.ge.s32.totalorder %s1122_s26, 4   ;;  %s1285_s21 = smov %s959_s22 }
 0x23a   : > { %s1286_s22 = smov %s963_s23  ;;  %s1287_s23 = smov %s1138_s11 }
 0x23b   : > { %s1288_s24 = smov %s1122_s26  ;;  %22 = sbr.rel (!%p20_p2) target bundleno = 6 (0x6), region = 97 }
 0x242   :  { %574 = vsyncpa [#allocation3], 1 }
 0x243   :  { %576 = vsyncpa [#allocation3 + $0x1], 1 }
 0x244   :  { %577 = vsyncpa [#allocation6], 1 }
 0x245   :  { %578 = vsyncpa [#allocation4], 1 }
 0x246   :  { %580 = vsyncpa [#allocation4 + $0x1], 1 }

</bundles_post_ra>
